<compile_context>
chip_gen: v7x
topology: tpu7x:2x2x1
jax: 0.10.0
libtpu: 0.0.40
codegen_flags: <defaults>
</compile_context>

<pallas_src>
import functools

import jax
import jax.numpy as jnp
import numpy as np
from jax.experimental import pallas as pl
from jax.experimental.pallas import tpu as pltpu


def _cdiv(a, b):
    return -(-a // b)


def _round_up(x, m):
    return ((x + m - 1) // m) * m


def _device_kind():
    try:
        return jax.devices()[0].device_kind.lower()
    except Exception:
        return ""


def _bf16_compute_ok():
    # v6e / v7x have bf16-capable VPU/EUP; v5e and older do not.
    kind = _device_kind()
    return ("v6" in kind) or ("v7" in kind)


def _is_multi_tensorcore():
    # v7x packs 2 TensorCores per chip.
    return "v7" in _device_kind()


def _vmem_budget_and_limit():
    """Generation-aware VMEM budget (tiling math) and scoped VMEM limit."""
    try:
        cap = int(pltpu.get_tpu_info().vmem_capacity_bytes)
    except Exception:
        cap = 0
    if cap <= 0:
        cap = 64 * 1024 * 1024            # conservative fallback (v7x-sized)
    limit = (cap * 5) // 8                # 80 MiB on 128 MiB parts, 40 on 64
    budget = cap // 2                     # headroom for compiler scratch
    return budget, limit


def _pick_rows(n_rows, c_in, n_classes, logit_bytes, label_bytes, budget,
               granule):
    """Rows (of 128 lanes) per grid step: the largest tile fitting the VMEM
    budget, capped at the (rounded-up) image so we never tile past it."""
    if n_rows < granule:
        return n_rows                     # single full-extent row block

    cap = _round_up(n_rows, granule)

    def est(rows):
        t = rows * 128
        return (2 * c_in * t * logit_bytes      # logits, double-buffered
                + 2 * t * label_bytes           # labels, double-buffered
                + 2 * n_classes * t * 4)        # two f32 scratch accumulators

    for cand in (4096, 2048, 1024, 512, 256, 128, 64, 32, 16, 8):
        if cand % granule:
            continue
        rows = min(cand, cap)
        if est(rows) <= budget:
            return rows
    return granule


def _make_kernel(*, c_in, n_classes, beta, mode, binary, spatial, rows, tpc,
                 divisible, compute_dtype):
    """Per-tile kernel. Emits per-(batch, chunk) (C, 2) = [inter, card]."""
    cdt = compute_dtype
    tile_lanes = rows * 128

    def kernel(logits_ref, target_ref, out_ref, inter_acc, card_acc):
        ch = pl.program_id(1)
        t = pl.program_id(2)

        zero = jnp.asarray(0.0, cdt)
        one = jnp.asarray(1.0, cdt)
        beta_c = jnp.asarray(beta, cdt)
        omb_c = jnp.asarray(1.0 - beta, cdt)

        # Zero the per-(batch, chunk) accumulators at the start of each sweep.
        @pl.when(t == 0)
        def _():
            inter_acc[...] = jnp.zeros_like(inter_acc)
            card_acc[...] = jnp.zeros_like(card_acc)

        g = ch * tpc + t                  # global row-block index

        def accumulate(masked):
            labels = target_ref[...].astype(jnp.int32)              # (rows,128)
            xs = [logits_ref[c].astype(cdt) for c in range(c_in)]   # (rows,128)

            if masked:
                row = jax.lax.broadcasted_iota(jnp.int32, (rows, 128), 0)
                lane = jax.lax.broadcasted_iota(jnp.int32, (rows, 128), 1)
                pos = (g * rows + row) * 128 + lane
                valid = pos < spatial
                # Boundary blocks may hold garbage — sanitise before exp.
                xs = [jnp.where(valid, x, zero) for x in xs]

            if binary:
                # Single-logit sigmoid; probas = [1 - p, p].
                denom = one + jnp.exp(-xs[0])
                pos_p = pl.reciprocal(denom.astype(jnp.float32),
                                      approx=True).astype(cdt)
                probas = [one - pos_p, pos_p]
            else:
                # Softmax over classes: full-vreg VALU max/adds, one EUP
                # reciprocal (approx) — no cross-sublane reduce.
                m = xs[0]
                for x in xs[1:]:
                    m = jnp.maximum(m, x)
                es = [jnp.exp(x - m) for x in xs]
                denom = es[0]
                for e in es[1:]:
                    denom = denom + e
                inv = pl.reciprocal(denom.astype(jnp.float32),
                                    approx=True).astype(cdt)
                probas = [e * inv for e in es]

            for c in range(n_classes):
                p = probas[c]
                gt_term = jnp.where(labels == c, beta_c, zero)
                if mode == 'soft':
                    boot = gt_term + omb_c * p
                else:  # 'hard'
                    boot = gt_term + jnp.where(p > 0.5, omb_c, zero)
                inter_c = p * boot
                card_c = p + boot
                if masked:
                    inter_c = jnp.where(valid, inter_c, zero)
                    card_c = jnp.where(valid, card_c, zero)
                inter_acc[c] = inter_acc[c] + inter_c.astype(jnp.float32)
                card_acc[c] = card_acc[c] + card_c.astype(jnp.float32)

        if divisible:
            # Exact tiling: no masking traced anywhere in the hot loop.
            accumulate(masked=False)
        else:
            interior = (g + 1) * tile_lanes <= spatial

            @pl.when(interior)
            def _():
                accumulate(masked=False)

            @pl.when(jnp.logical_not(interior))
            def _():
                accumulate(masked=True)

        # Epilogue: one narrow reduce + tiny (C, 2) store per (batch, chunk).
        @pl.when(t == pl.num_programs(2) - 1)
        def _():
            inter = jnp.sum(jnp.sum(inter_acc[...], axis=1), axis=-1,
                            keepdims=True)                           # (C, 1)
            card = jnp.sum(jnp.sum(card_acc[...], axis=1), axis=-1,
                           keepdims=True)                            # (C, 1)
            out_ref[:, 0:1] = inter
            out_ref[:, 1:2] = card

    return kernel


def bootstrap_dice_loss(output, target, *, beta=0.8, eps=1e-7, mode='hard',
                        _force_rows=None, _force_chunks=None):
    """JAX/Pallas equivalent of BootstrapDiceLoss.forward.

    output: (N, C, *spatial) float logits (f32, or bf16 kept on the HBM wire)
    target: (N, *spatial) or (N, 1, *spatial) integer labelmap
    """
    output = jnp.asarray(output)
    target = jnp.asarray(target)
    if target.ndim == output.ndim - 1:
        target = target[:, None]

    N, c_in = int(output.shape[0]), int(output.shape[1])
    n_classes = 2 if c_in == 1 else c_in
    binary = (c_in == 1)
    spatial = int(np.prod(output.shape[2:])) if output.ndim > 2 else 1

    # Logits stay in their native float dtype on the HBM wire (bf16 halves
    # read traffic); elementwise math runs in bf16 only on bf16-capable VPUs.
    if output.dtype == np.dtype(jnp.bfloat16):
        compute_dtype = jnp.bfloat16 if _bf16_compute_ok() else jnp.float32
    else:
        if output.dtype != np.dtype(jnp.float32):
            output = output.astype(jnp.float32)
        compute_dtype = jnp.float32

    # Labels: small integer dtypes pass straight through when layout allows.
    if target.dtype not in (np.dtype(jnp.int8), np.dtype(jnp.uint8),
                            np.dtype(jnp.int32)):
        target = target.astype(jnp.int32)

    # Lay the flattened spatial axis out as (rows, 128) so every vreg is fully
    # occupied by spatial positions; pad only the sub-128 tail (if any).
    n_rows = _cdiv(spatial, 128)
    s_pad = n_rows * 128
    logits = output.reshape(N, c_in, spatial)
    tgt = target.reshape(N, spatial)
    if s_pad != spatial:
        logits = jnp.pad(logits, ((0, 0), (0, 0), (0, s_pad - spatial)))
        tgt = jnp.pad(tgt, ((0, 0), (0, s_pad - spatial)))
    logits = logits.reshape(N, c_in, n_rows, 128)
    tgt = tgt.reshape(N, n_rows, 128)

    budget, vmem_limit = _vmem_budget_and_limit()
    granule = 16 if logits.dtype == np.dtype(jnp.bfloat16) else 8
    rows = int(_force_rows) if _force_rows else _pick_rows(
        n_rows, c_in, n_classes, logits.dtype.itemsize, tgt.dtype.itemsize,
        budget, granule)
    # Sub-32-bit labels want 32-row-aligned blocks for clean sublane packing.
    if tgt.dtype.itemsize == 1 and rows % 32 != 0:
        tgt = tgt.astype(jnp.int32)

    n_tiles = _cdiv(n_rows, rows)
    if _force_chunks:
        chunks = int(_force_chunks)
    elif N == 1 and n_tiles >= 4 and _is_multi_tensorcore():
        chunks = 2          # keep both v7x TensorCores busy at batch size 1
    else:
        chunks = 1
    tpc = _cdiv(n_tiles, chunks)                     # tiles per chunk
    divisible = (chunks * tpc * rows * 128 == spatial)
    max_blk = n_tiles - 1                            # keep DMAs in bounds

    def logits_map(n, ch, t):
        return (n, 0, jnp.minimum(ch * tpc + t, max_blk), 0)

    def target_map(n, ch, t):
        return (n, jnp.minimum(ch * tpc + t, max_blk), 0)

    def out_map(n, ch, t):
        return (n, ch, 0, 0)

    kernel = _make_kernel(c_in=c_in, n_classes=n_classes, beta=float(beta),
                          mode=mode, binary=binary, spatial=spatial, rows=rows,
                          tpc=tpc, divisible=divisible,
                          compute_dtype=compute_dtype)

    partials = pl.pallas_call(
        kernel,
        out_shape=jax.ShapeDtypeStruct((N, chunks, n_classes, 2), jnp.float32),
        grid_spec=pltpu.PrefetchScalarGridSpec(
            num_scalar_prefetch=0,
            grid=(N, chunks, tpc),
            in_specs=[
                pl.BlockSpec((None, c_in, rows, 128), logits_map),
                pl.BlockSpec((None, rows, 128), target_map),
            ],
            out_specs=pl.BlockSpec((None, None, n_classes, 2), out_map),
            scratch_shapes=[
                pltpu.VMEM((n_classes, rows, 128), jnp.float32),  # intersect.
                pltpu.VMEM((n_classes, rows, 128), jnp.float32),  # cardinal.
            ],
        ),
        compiler_params=pltpu.CompilerParams(
            # Batch and chunk axes carry independent partial sums -> parallel
            # (megacore shards them); the spatial sweep owns the accumulator.
            dimension_semantics=("parallel", "parallel", "arbitrary"),
            vmem_limit_bytes=int(vmem_limit),
        ),
    )(logits, tgt)

    # Tiny glue: fold partials over (batch, chunk) and form the dice ratio.
    sums = jnp.sum(partials, axis=(0, 1))            # (C, 2)
    intersection = sums[:, 0]
    cardinality = sums[:, 1]
    dice = jnp.mean(2.0 * intersection / (cardinality + eps))
    return 1.0 - dice


def _reference_loss(output, target, *, beta=0.8, eps=1e-7, mode='hard'):
    """Pure-JAX port of the PyTorch forward, for verification only."""
    output = jnp.asarray(output, jnp.float32)
    target = jnp.asarray(target)
    if target.ndim == output.ndim - 1:
        target = target[:, None]
    n_classes = output.shape[1]
    n_classes = 2 if n_classes == 1 else n_classes
    empty = (1,) * (target.ndim - 2)
    k = jnp.arange(n_classes).reshape((1, n_classes) + empty)
    onehot = (target == k).astype(output.dtype)
    if n_classes == 2 and output.shape[1] == 1:
        pos = jax.nn.sigmoid(output)
        probas = jnp.concatenate([1 - pos, pos], axis=1)
    else:
        probas = jax.nn.softmax(output, axis=1)
    if mode == 'soft':
        boot = beta * onehot + (1.0 - beta) * probas
    else:
        boot = beta * onehot + (1.0 - beta) * (probas > 0.5).astype(jnp.float32)
    dims = (0,) + tuple(range(2, boot.ndim))
    inter = jnp.sum(probas * boot, axis=dims)
    card = jnp.sum(probas + boot, axis=dims)
    return 1.0 - jnp.mean(2.0 * inter / (card + eps))


if __name__ == "__main__":
    keys = jax.random.split(jax.random.PRNGKey(0), 12)

    def _check(name, logits, labels, mode, tol=3e-3, **kw):
        loss_fn = jax.jit(functools.partial(bootstrap_dice_loss, beta=0.8,
                                            eps=1e-7, mode=mode, **kw))
        loss = jax.block_until_ready(loss_fn(logits, labels))
        ref = jax.block_until_ready(
            _reference_loss(logits, labels, beta=0.8, eps=1e-7, mode=mode))
        assert jnp.isfinite(loss), f"{name}: loss is not finite"
        # Approx-reciprocal softmax -> loose-but-meaningful scalar tolerance.
        assert abs(float(loss) - float(ref)) < tol, \
            (name, float(loss), float(ref))

    # A: multi-class 'hard', spatial an exact multiple of 128 (no masking).
    logits = jax.random.normal(keys[0], (2, 4, 16, 16), dtype=jnp.float32)
    labels = jax.random.randint(keys[1], (2, 16, 16), 0, 4, dtype=jnp.int32)
    _check("multiclass_hard", logits, labels, "hard")

    # B: multi-class 'soft', spatial not a multiple of 128 (masked boundary).
    logits = jax.random.normal(keys[2], (2, 3, 20, 40), dtype=jnp.float32)
    labels = jax.random.randint(keys[3], (2, 20, 40), 0, 3, dtype=jnp.int32)
    _check("multiclass_soft_masked", logits, labels, "soft")

    # C: binary single-logit (sigmoid) path.
    logits = jax.random.normal(keys[4], (2, 1, 16, 16), dtype=jnp.float32)
    labels = jax.random.randint(keys[5], (2, 16, 16), 0, 2, dtype=jnp.int32)
    _check("binary_hard", logits, labels, "hard")

    # D: bf16 logits (bf16 elementwise math on v6e/v7x, f32 elsewhere).
    logits = jax.random.normal(keys[6], (2, 4, 32, 32), dtype=jnp.bfloat16)
    labels = jax.random.randint(keys[7], (2, 32, 32), 0, 4, dtype=jnp.int32)
    _check("multiclass_soft_bf16", logits, labels, "soft", tol=2e-2)

    # E: multi-tile sweep split into 2 parallel chunks (v7x megacore path),
    # exercised explicitly regardless of the local chip generation.
    logits = jax.random.normal(keys[8], (1, 3, 64, 128), dtype=jnp.float32)
    labels = jax.random.randint(keys[9], (1, 64, 128), 0, 3, dtype=jnp.int32)
    _check("chunked_multitile_hard", logits, labels, "hard",
           _force_rows=16, _force_chunks=2)

    # F: multi-tile with a masked partial boundary tile (interior steps stay
    # on the unmasked fast path).
    logits = jax.random.normal(keys[10], (2, 4, 40, 40), dtype=jnp.float32)
    labels = jax.random.randint(keys[11], (2, 40, 40), 0, 4, dtype=jnp.int32)
    _check("multitile_masked_hard", logits, labels, "hard", _force_rows=8)

    print("KERNEL_OK")
</pallas_src>

<mosaic_0001>
module attributes {stable_mosaic.version = 11 : i64} {
  func.func @kernel(%arg0: i32, %arg1: i32, %arg2: i32, %arg3: memref<1x4x2x128xf32, #tpu.memory_space<vmem>>, %arg4: memref<1x2x128xi32, #tpu.memory_space<vmem>>, %arg5: memref<1x1x4x2xf32, #tpu.memory_space<vmem>>, %arg6: memref<4x2x128xf32, #tpu.memory_space<vmem>>, %arg7: memref<4x2x128xf32, #tpu.memory_space<vmem>>) attributes {dimension_semantics = [#tpu.dimension_semantics<parallel>, #tpu.dimension_semantics<parallel>, #tpu.dimension_semantics<arbitrary>], iteration_bounds = array<i64: 2, 1, 1>, scalar_prefetch = 0 : i64, scratch_operands = 2 : i64, tpu.core_type = #tpu.core_type<tc>, window_params = [{transform_indices = @transform_0, window_bounds = array<i64: 1, 4, 2, 128>}, {transform_indices = @transform_1, window_bounds = array<i64: 1, 2, 128>}, {transform_indices = @transform_2, window_bounds = array<i64: 1, 1, 4, 2>}]} {
    %c0_i32 = arith.constant 0 : i32
    %0 = arith.cmpi eq, %arg2, %c0_i32 : i32
    %1 = arith.extui %0 : i1 to i32
    %c0_i32_0 = arith.constant 0 : i32
    %2 = arith.cmpi ne, %1, %c0_i32_0 : i32
    scf.if %2 {
      %cst_86 = arith.constant 0.000000e+00 : f32
      %135 = vector.broadcast %cst_86 : f32 to vector<4x2x128xf32>
      %c0_87 = arith.constant 0 : index
      %c0_88 = arith.constant 0 : index
      %c0_89 = arith.constant 0 : index
      %136 = vector.load %arg6[%c0_87, %c0_88, %c0_89] : memref<4x2x128xf32, #tpu.memory_space<vmem>>, vector<4x2x128xf32>
      tpu.vector_store %arg6[%c0_87, %c0_88, %c0_89], %135 {strides = array<i32>} : memref<4x2x128xf32, #tpu.memory_space<vmem>>, vector<4x2x128xf32>,
      %cst_90 = arith.constant 0.000000e+00 : f32
      %137 = vector.broadcast %cst_90 : f32 to vector<4x2x128xf32>
      %c0_91 = arith.constant 0 : index
      %c0_92 = arith.constant 0 : index
      %c0_93 = arith.constant 0 : index
      %138 = vector.load %arg7[%c0_91, %c0_92, %c0_93] : memref<4x2x128xf32, #tpu.memory_space<vmem>>, vector<4x2x128xf32>
      tpu.vector_store %arg7[%c0_91, %c0_92, %c0_93], %137 {strides = array<i32>} : memref<4x2x128xf32, #tpu.memory_space<vmem>>, vector<4x2x128xf32>,
    } else {
    }
    %c0 = arith.constant 0 : index
    %c0_1 = arith.constant 0 : index
    %c0_2 = arith.constant 0 : index
    %3 = vector.load %arg4[%c0, %c0_1, %c0_2] : memref<1x2x128xi32, #tpu.memory_space<vmem>>, vector<1x2x128xi32>
    %4 = vector.shape_cast %3 : vector<1x2x128xi32> to vector<2x128xi32>
    %c0_3 = arith.constant 0 : index
    %c0_4 = arith.constant 0 : index
    %c0_5 = arith.constant 0 : index
    %c0_6 = arith.constant 0 : index
    %5 = vector.load %arg3[%c0_3, %c0_4, %c0_5, %c0_6] : memref<1x4x2x128xf32, #tpu.memory_space<vmem>>, vector<1x1x2x128xf32>
    %6 = vector.shape_cast %5 : vector<1x1x2x128xf32> to vector<2x128xf32>
    %c0_7 = arith.constant 0 : index
    %c1 = arith.constant 1 : index
    %c0_8 = arith.constant 0 : index
    %c0_9 = arith.constant 0 : index
    %7 = vector.load %arg3[%c0_7, %c1, %c0_8, %c0_9] : memref<1x4x2x128xf32, #tpu.memory_space<vmem>>, vector<1x1x2x128xf32>
    %8 = vector.shape_cast %7 : vector<1x1x2x128xf32> to vector<2x128xf32>
    %c0_10 = arith.constant 0 : index
    %c2 = arith.constant 2 : index
    %c0_11 = arith.constant 0 : index
    %c0_12 = arith.constant 0 : index
    %9 = vector.load %arg3[%c0_10, %c2, %c0_11, %c0_12] : memref<1x4x2x128xf32, #tpu.memory_space<vmem>>, vector<1x1x2x128xf32>
    %10 = vector.shape_cast %9 : vector<1x1x2x128xf32> to vector<2x128xf32>
    %c0_13 = arith.constant 0 : index
    %c3 = arith.constant 3 : index
    %c0_14 = arith.constant 0 : index
    %c0_15 = arith.constant 0 : index
    %11 = vector.load %arg3[%c0_13, %c3, %c0_14, %c0_15] : memref<1x4x2x128xf32, #tpu.memory_space<vmem>>, vector<1x1x2x128xf32>
    %12 = vector.shape_cast %11 : vector<1x1x2x128xf32> to vector<2x128xf32>
    %13 = arith.maximumf %6, %8 : vector<2x128xf32>
    %14 = arith.maximumf %13, %10 : vector<2x128xf32>
    %15 = arith.maximumf %14, %12 : vector<2x128xf32>
    %16 = arith.subf %6, %15 : vector<2x128xf32>
    %17 = math.exp %16 : vector<2x128xf32>
    %18 = arith.subf %8, %15 : vector<2x128xf32>
    %19 = math.exp %18 : vector<2x128xf32>
    %20 = arith.subf %10, %15 : vector<2x128xf32>
    %21 = math.exp %20 : vector<2x128xf32>
    %22 = arith.subf %12, %15 : vector<2x128xf32>
    %23 = math.exp %22 : vector<2x128xf32>
    %24 = arith.addf %17, %19 : vector<2x128xf32>
    %25 = arith.addf %24, %21 : vector<2x128xf32>
    %26 = arith.addf %25, %23 : vector<2x128xf32>
    %27 = tpu.reciprocal %26 {approx = true} : vector<2x128xf32> -> vector<2x128xf32>
    %28 = arith.mulf %17, %27 : vector<2x128xf32>
    %29 = arith.mulf %19, %27 : vector<2x128xf32>
    %30 = arith.mulf %21, %27 : vector<2x128xf32>
    %31 = arith.mulf %23, %27 : vector<2x128xf32>
    %c0_i32_16 = arith.constant 0 : i32
    %32 = vector.broadcast %c0_i32_16 : i32 to vector<2x128xi32>
    %33 = arith.cmpi eq, %4, %32 : vector<2x128xi32>
    %cst = arith.constant 8.000000e-01 : f32
    %cst_17 = arith.constant 0.000000e+00 : f32
    %34 = vector.broadcast %cst : f32 to vector<2x128xf32>
    %35 = vector.broadcast %cst_17 : f32 to vector<2x128xf32>
    %36 = arith.select %33, %34, %35 : vector<2x128xi1>, vector<2x128xf32>
    %cst_18 = arith.constant 5.000000e-01 : f32
    %37 = vector.broadcast %cst_18 : f32 to vector<2x128xf32>
    %38 = arith.cmpf ogt, %28, %37 : vector<2x128xf32>
    %cst_19 = arith.constant 2.000000e-01 : f32
    %cst_20 = arith.constant 0.000000e+00 : f32
    %39 = vector.broadcast %cst_19 : f32 to vector<2x128xf32>
    %40 = vector.broadcast %cst_20 : f32 to vector<2x128xf32>
    %41 = arith.select %38, %39, %40 : vector<2x128xi1>, vector<2x128xf32>
    %42 = arith.addf %36, %41 : vector<2x128xf32>
    %43 = arith.mulf %28, %42 : vector<2x128xf32>
    %44 = arith.addf %28, %42 : vector<2x128xf32>
    %c0_21 = arith.constant 0 : index
    %c0_22 = arith.constant 0 : index
    %c0_23 = arith.constant 0 : index
    %45 = vector.load %arg6[%c0_21, %c0_22, %c0_23] : memref<4x2x128xf32, #tpu.memory_space<vmem>>, vector<1x2x128xf32>
    %46 = vector.shape_cast %45 : vector<1x2x128xf32> to vector<2x128xf32>
    %47 = arith.addf %46, %43 : vector<2x128xf32>
    %c0_24 = arith.constant 0 : index
    %c0_25 = arith.constant 0 : index
    %c0_26 = arith.constant 0 : index
    %48 = vector.load %arg6[%c0_24, %c0_25, %c0_26] : memref<4x2x128xf32, #tpu.memory_space<vmem>>, vector<1x2x128xf32>
    %49 = vector.shape_cast %48 : vector<1x2x128xf32> to vector<2x128xf32>
    %50 = vector.shape_cast %47 : vector<2x128xf32> to vector<1x2x128xf32>
    tpu.vector_store %arg6[%c0_24, %c0_25, %c0_26], %50 {strides = array<i32>} : memref<4x2x128xf32, #tpu.memory_space<vmem>>, vector<1x2x128xf32>,
    %c0_27 = arith.constant 0 : index
    %c0_28 = arith.constant 0 : index
    %c0_29 = arith.constant 0 : index
    %51 = vector.load %arg7[%c0_27, %c0_28, %c0_29] : memref<4x2x128xf32, #tpu.memory_space<vmem>>, vector<1x2x128xf32>
    %52 = vector.shape_cast %51 : vector<1x2x128xf32> to vector<2x128xf32>
    %53 = arith.addf %52, %44 : vector<2x128xf32>
    %c0_30 = arith.constant 0 : index
    %c0_31 = arith.constant 0 : index
    %c0_32 = arith.constant 0 : index
    %54 = vector.load %arg7[%c0_30, %c0_31, %c0_32] : memref<4x2x128xf32, #tpu.memory_space<vmem>>, vector<1x2x128xf32>
    %55 = vector.shape_cast %54 : vector<1x2x128xf32> to vector<2x128xf32>
    %56 = vector.shape_cast %53 : vector<2x128xf32> to vector<1x2x128xf32>
    tpu.vector_store %arg7[%c0_30, %c0_31, %c0_32], %56 {strides = array<i32>} : memref<4x2x128xf32, #tpu.memory_space<vmem>>, vector<1x2x128xf32>,
    %c1_i32 = arith.constant 1 : i32
    %57 = vector.broadcast %c1_i32 : i32 to vector<2x128xi32>
    %58 = arith.cmpi eq, %4, %57 : vector<2x128xi32>
    %cst_33 = arith.constant 8.000000e-01 : f32
    %cst_34 = arith.constant 0.000000e+00 : f32
    %59 = vector.broadcast %cst_33 : f32 to vector<2x128xf32>
    %60 = vector.broadcast %cst_34 : f32 to vector<2x128xf32>
    %61 = arith.select %58, %59, %60 : vector<2x128xi1>, vector<2x128xf32>
    %cst_35 = arith.constant 5.000000e-01 : f32
    %62 = vector.broadcast %cst_35 : f32 to vector<2x128xf32>
    %63 = arith.cmpf ogt, %29, %62 : vector<2x128xf32>
    %cst_36 = arith.constant 2.000000e-01 : f32
    %cst_37 = arith.constant 0.000000e+00 : f32
    %64 = vector.broadcast %cst_36 : f32 to vector<2x128xf32>
    %65 = vector.broadcast %cst_37 : f32 to vector<2x128xf32>
    %66 = arith.select %63, %64, %65 : vector<2x128xi1>, vector<2x128xf32>
    %67 = arith.addf %61, %66 : vector<2x128xf32>
    %68 = arith.mulf %29, %67 : vector<2x128xf32>
    %69 = arith.addf %29, %67 : vector<2x128xf32>
    %c1_38 = arith.constant 1 : index
    %c0_39 = arith.constant 0 : index
    %c0_40 = arith.constant 0 : index
    %70 = vector.load %arg6[%c1_38, %c0_39, %c0_40] : memref<4x2x128xf32, #tpu.memory_space<vmem>>, vector<1x2x128xf32>
    %71 = vector.shape_cast %70 : vector<1x2x128xf32> to vector<2x128xf32>
    %72 = arith.addf %71, %68 : vector<2x128xf32>
    %c1_41 = arith.constant 1 : index
    %c0_42 = arith.constant 0 : index
    %c0_43 = arith.constant 0 : index
    %73 = vector.load %arg6[%c1_41, %c0_42, %c0_43] : memref<4x2x128xf32, #tpu.memory_space<vmem>>, vector<1x2x128xf32>
    %74 = vector.shape_cast %73 : vector<1x2x128xf32> to vector<2x128xf32>
    %75 = vector.shape_cast %72 : vector<2x128xf32> to vector<1x2x128xf32>
    tpu.vector_store %arg6[%c1_41, %c0_42, %c0_43], %75 {strides = array<i32>} : memref<4x2x128xf32, #tpu.memory_space<vmem>>, vector<1x2x128xf32>,
    %c1_44 = arith.constant 1 : index
    %c0_45 = arith.constant 0 : index
    %c0_46 = arith.constant 0 : index
    %76 = vector.load %arg7[%c1_44, %c0_45, %c0_46] : memref<4x2x128xf32, #tpu.memory_space<vmem>>, vector<1x2x128xf32>
    %77 = vector.shape_cast %76 : vector<1x2x128xf32> to vector<2x128xf32>
    %78 = arith.addf %77, %69 : vector<2x128xf32>
    %c1_47 = arith.constant 1 : index
    %c0_48 = arith.constant 0 : index
    %c0_49 = arith.constant 0 : index
    %79 = vector.load %arg7[%c1_47, %c0_48, %c0_49] : memref<4x2x128xf32, #tpu.memory_space<vmem>>, vector<1x2x128xf32>
    %80 = vector.shape_cast %79 : vector<1x2x128xf32> to vector<2x128xf32>
    %81 = vector.shape_cast %78 : vector<2x128xf32> to vector<1x2x128xf32>
    tpu.vector_store %arg7[%c1_47, %c0_48, %c0_49], %81 {strides = array<i32>} : memref<4x2x128xf32, #tpu.memory_space<vmem>>, vector<1x2x128xf32>,
    %c2_i32 = arith.constant 2 : i32
    %82 = vector.broadcast %c2_i32 : i32 to vector<2x128xi32>
    %83 = arith.cmpi eq, %4, %82 : vector<2x128xi32>
    %cst_50 = arith.constant 8.000000e-01 : f32
    %cst_51 = arith.constant 0.000000e+00 : f32
    %84 = vector.broadcast %cst_50 : f32 to vector<2x128xf32>
    %85 = vector.broadcast %cst_51 : f32 to vector<2x128xf32>
    %86 = arith.select %83, %84, %85 : vector<2x128xi1>, vector<2x128xf32>
    %cst_52 = arith.constant 5.000000e-01 : f32
    %87 = vector.broadcast %cst_52 : f32 to vector<2x128xf32>
    %88 = arith.cmpf ogt, %30, %87 : vector<2x128xf32>
    %cst_53 = arith.constant 2.000000e-01 : f32
    %cst_54 = arith.constant 0.000000e+00 : f32
    %89 = vector.broadcast %cst_53 : f32 to vector<2x128xf32>
    %90 = vector.broadcast %cst_54 : f32 to vector<2x128xf32>
    %91 = arith.select %88, %89, %90 : vector<2x128xi1>, vector<2x128xf32>
    %92 = arith.addf %86, %91 : vector<2x128xf32>
    %93 = arith.mulf %30, %92 : vector<2x128xf32>
    %94 = arith.addf %30, %92 : vector<2x128xf32>
    %c2_55 = arith.constant 2 : index
    %c0_56 = arith.constant 0 : index
    %c0_57 = arith.constant 0 : index
    %95 = vector.load %arg6[%c2_55, %c0_56, %c0_57] : memref<4x2x128xf32, #tpu.memory_space<vmem>>, vector<1x2x128xf32>
    %96 = vector.shape_cast %95 : vector<1x2x128xf32> to vector<2x128xf32>
    %97 = arith.addf %96, %93 : vector<2x128xf32>
    %c2_58 = arith.constant 2 : index
    %c0_59 = arith.constant 0 : index
    %c0_60 = arith.constant 0 : index
    %98 = vector.load %arg6[%c2_58, %c0_59, %c0_60] : memref<4x2x128xf32, #tpu.memory_space<vmem>>, vector<1x2x128xf32>
    %99 = vector.shape_cast %98 : vector<1x2x128xf32> to vector<2x128xf32>
    %100 = vector.shape_cast %97 : vector<2x128xf32> to vector<1x2x128xf32>
    tpu.vector_store %arg6[%c2_58, %c0_59, %c0_60], %100 {strides = array<i32>} : memref<4x2x128xf32, #tpu.memory_space<vmem>>, vector<1x2x128xf32>,
    %c2_61 = arith.constant 2 : index
    %c0_62 = arith.constant 0 : index
    %c0_63 = arith.constant 0 : index
    %101 = vector.load %arg7[%c2_61, %c0_62, %c0_63] : memref<4x2x128xf32, #tpu.memory_space<vmem>>, vector<1x2x128xf32>
    %102 = vector.shape_cast %101 : vector<1x2x128xf32> to vector<2x128xf32>
    %103 = arith.addf %102, %94 : vector<2x128xf32>
    %c2_64 = arith.constant 2 : index
    %c0_65 = arith.constant 0 : index
    %c0_66 = arith.constant 0 : index
    %104 = vector.load %arg7[%c2_64, %c0_65, %c0_66] : memref<4x2x128xf32, #tpu.memory_space<vmem>>, vector<1x2x128xf32>
    %105 = vector.shape_cast %104 : vector<1x2x128xf32> to vector<2x128xf32>
    %106 = vector.shape_cast %103 : vector<2x128xf32> to vector<1x2x128xf32>
    tpu.vector_store %arg7[%c2_64, %c0_65, %c0_66], %106 {strides = array<i32>} : memref<4x2x128xf32, #tpu.memory_space<vmem>>, vector<1x2x128xf32>,
    %c3_i32 = arith.constant 3 : i32
    %107 = vector.broadcast %c3_i32 : i32 to vector<2x128xi32>
    %108 = arith.cmpi eq, %4, %107 : vector<2x128xi32>
    %cst_67 = arith.constant 8.000000e-01 : f32
    %cst_68 = arith.constant 0.000000e+00 : f32
    %109 = vector.broadcast %cst_67 : f32 to vector<2x128xf32>
    %110 = vector.broadcast %cst_68 : f32 to vector<2x128xf32>
    %111 = arith.select %108, %109, %110 : vector<2x128xi1>, vector<2x128xf32>
    %cst_69 = arith.constant 5.000000e-01 : f32
    %112 = vector.broadcast %cst_69 : f32 to vector<2x128xf32>
    %113 = arith.cmpf ogt, %31, %112 : vector<2x128xf32>
    %cst_70 = arith.constant 2.000000e-01 : f32
    %cst_71 = arith.constant 0.000000e+00 : f32
    %114 = vector.broadcast %cst_70 : f32 to vector<2x128xf32>
    %115 = vector.broadcast %cst_71 : f32 to vector<2x128xf32>
    %116 = arith.select %113, %114, %115 : vector<2x128xi1>, vector<2x128xf32>
    %117 = arith.addf %111, %116 : vector<2x128xf32>
    %118 = arith.mulf %31, %117 : vector<2x128xf32>
    %119 = arith.addf %31, %117 : vector<2x128xf32>
    %c3_72 = arith.constant 3 : index
    %c0_73 = arith.constant 0 : index
    %c0_74 = arith.constant 0 : index
    %120 = vector.load %arg6[%c3_72, %c0_73, %c0_74] : memref<4x2x128xf32, #tpu.memory_space<vmem>>, vector<1x2x128xf32>
    %121 = vector.shape_cast %120 : vector<1x2x128xf32> to vector<2x128xf32>
    %122 = arith.addf %121, %118 : vector<2x128xf32>
    %c3_75 = arith.constant 3 : index
    %c0_76 = arith.constant 0 : index
    %c0_77 = arith.constant 0 : index
    %123 = vector.load %arg6[%c3_75, %c0_76, %c0_77] : memref<4x2x128xf32, #tpu.memory_space<vmem>>, vector<1x2x128xf32>
    %124 = vector.shape_cast %123 : vector<1x2x128xf32> to vector<2x128xf32>
    %125 = vector.shape_cast %122 : vector<2x128xf32> to vector<1x2x128xf32>
    tpu.vector_store %arg6[%c3_75, %c0_76, %c0_77], %125 {strides = array<i32>} : memref<4x2x128xf32, #tpu.memory_space<vmem>>, vector<1x2x128xf32>,
    %c3_78 = arith.constant 3 : index
    %c0_79 = arith.constant 0 : index
    %c0_80 = arith.constant 0 : index
    %126 = vector.load %arg7[%c3_78, %c0_79, %c0_80] : memref<4x2x128xf32, #tpu.memory_space<vmem>>, vector<1x2x128xf32>
    %127 = vector.shape_cast %126 : vector<1x2x128xf32> to vector<2x128xf32>
    %128 = arith.addf %127, %119 : vector<2x128xf32>
    %c3_81 = arith.constant 3 : index
    %c0_82 = arith.constant 0 : index
    %c0_83 = arith.constant 0 : index
    %129 = vector.load %arg7[%c3_81, %c0_82, %c0_83] : memref<4x2x128xf32, #tpu.memory_space<vmem>>, vector<1x2x128xf32>
    %130 = vector.shape_cast %129 : vector<1x2x128xf32> to vector<2x128xf32>
    %131 = vector.shape_cast %128 : vector<2x128xf32> to vector<1x2x128xf32>
    tpu.vector_store %arg7[%c3_81, %c0_82, %c0_83], %131 {strides = array<i32>} : memref<4x2x128xf32, #tpu.memory_space<vmem>>, vector<1x2x128xf32>,
    %c0_i32_84 = arith.constant 0 : i32
    %132 = arith.cmpi eq, %arg2, %c0_i32_84 : i32
    %133 = arith.extui %132 : i1 to i32
    %c0_i32_85 = arith.constant 0 : i32
    %134 = arith.cmpi ne, %133, %c0_i32_85 : i32
    scf.if %134 {
      %c0_86 = arith.constant 0 : index
      %c0_87 = arith.constant 0 : index
      %c0_88 = arith.constant 0 : index
      %135 = vector.load %arg6[%c0_86, %c0_87, %c0_88] : memref<4x2x128xf32, #tpu.memory_space<vmem>>, vector<4x2x128xf32>
      %cst_89 = arith.constant dense<0.000000e+00> : vector<4x128xf32>
      %136 = vector.multi_reduction <add>, %135, %cst_89 [1] : vector<4x2x128xf32> to vector<4x128xf32>
      %cst_90 = arith.constant dense<0.000000e+00> : vector<4xf32>
      %137 = vector.multi_reduction <add>, %136, %cst_90 [1] : vector<4x128xf32> to vector<4xf32>
      %138 = vector.shape_cast %137 : vector<4xf32> to vector<4x1xf32>
      %c0_91 = arith.constant 0 : index
      %c0_92 = arith.constant 0 : index
      %c0_93 = arith.constant 0 : index
      %139 = vector.load %arg7[%c0_91, %c0_92, %c0_93] : memref<4x2x128xf32, #tpu.memory_space<vmem>>, vector<4x2x128xf32>
      %cst_94 = arith.constant dense<0.000000e+00> : vector<4x128xf32>
      %140 = vector.multi_reduction <add>, %139, %cst_94 [1] : vector<4x2x128xf32> to vector<4x128xf32>
      %cst_95 = arith.constant dense<0.000000e+00> : vector<4xf32>
      %141 = vector.multi_reduction <add>, %140, %cst_95 [1] : vector<4x128xf32> to vector<4xf32>
      %142 = vector.shape_cast %141 : vector<4xf32> to vector<4x1xf32>
      %c0_96 = arith.constant 0 : index
      %c0_97 = arith.constant 0 : index
      %c0_98 = arith.constant 0 : index
      %c0_99 = arith.constant 0 : index
      %143 = vector.load %arg5[%c0_96, %c0_97, %c0_98, %c0_99] : memref<1x1x4x2xf32, #tpu.memory_space<vmem>>, vector<1x1x4x1xf32>
      %144 = vector.shape_cast %143 : vector<1x1x4x1xf32> to vector<4x1xf32>
      %145 = vector.shape_cast %138 : vector<4x1xf32> to vector<1x1x4x1xf32>
      tpu.vector_store %arg5[%c0_96, %c0_97, %c0_98, %c0_99], %145 {strides = array<i32>} : memref<1x1x4x2xf32, #tpu.memory_space<vmem>>, vector<1x1x4x1xf32>,
      %c0_100 = arith.constant 0 : index
      %c0_101 = arith.constant 0 : index
      %c0_102 = arith.constant 0 : index
      %c1_103 = arith.constant 1 : index
      %146 = vector.load %arg5[%c0_100, %c0_101, %c0_102, %c1_103] : memref<1x1x4x2xf32, #tpu.memory_space<vmem>>, vector<1x1x4x1xf32>
      %147 = vector.shape_cast %146 : vector<1x1x4x1xf32> to vector<4x1xf32>
      %148 = vector.shape_cast %142 : vector<4x1xf32> to vector<1x1x4x1xf32>
      tpu.vector_store %arg5[%c0_100, %c0_101, %c0_102, %c1_103], %148 {strides = array<i32>} : memref<1x1x4x2xf32, #tpu.memory_space<vmem>>, vector<1x1x4x1xf32>,
    } else {
    }
    return
  }
  func.func @transform_0(%arg0: i32, %arg1: i32, %arg2: i32) -> (i32, i32, i32, i32) {
    %c1_i32 = arith.constant 1 : i32
    %0 = arith.muli %arg1, %c1_i32 : i32
    %1 = arith.addi %0, %arg2 : i32
    %c0_i32 = arith.constant 0 : i32
    %2 = arith.minsi %1, %c0_i32 : i32
    %c0_i32_0 = arith.constant 0 : i32
    %c0_i32_1 = arith.constant 0 : i32
    %c0_i32_2 = arith.constant 0 : i32
    return %arg0, %c0_i32_0, %2, %c0_i32_1 : i32, i32, i32, i32
  }
  func.func @transform_1(%arg0: i32, %arg1: i32, %arg2: i32) -> (i32, i32, i32) {
    %c1_i32 = arith.constant 1 : i32
    %0 = arith.muli %arg1, %c1_i32 : i32
    %1 = arith.addi %0, %arg2 : i32
    %c0_i32 = arith.constant 0 : i32
    %2 = arith.minsi %1, %c0_i32 : i32
    %c0_i32_0 = arith.constant 0 : i32
    %c0_i32_1 = arith.constant 0 : i32
    return %arg0, %2, %c0_i32_0 : i32, i32, i32
  }
  func.func @transform_2(%arg0: i32, %arg1: i32, %arg2: i32) -> (i32, i32, i32, i32) {
    %c0_i32 = arith.constant 0 : i32
    %c0_i32_0 = arith.constant 0 : i32
    %c0_i32_1 = arith.constant 0 : i32
    return %arg0, %arg1, %c0_i32, %c0_i32_0 : i32, i32, i32, i32
  }
}

</mosaic_0001>

<bundles_post_ra>
// kernel: bootstrap_dice_loss.1
= control target key start
LH: loop header
LB: loop body
LE: loop exit
PB: predicated region body
PF: predicated region fallthrough
CT: control target
= control target key end

     0   :  { %s634_s9 = smov 0   ;;  %s636_s10 = smov 0   ;;  %s705_s0 = inlined_call_operand.vmem [shape: f32[2,4,2,128], index: 0, kind: input, shape index: {}]   ;;  %s706_s1 = inlined_call_operand.vmem [shape: s32[2,2,128], index: 1, kind: input, shape index: {}]   ;;  %s707_s2 = inlined_call_operand.vmem [shape: f32[2,1,4,2], index: 2, kind: output, shape index: {}]  }
   0x1   :  { %s638_s11 = smov 0  }
   0x2 LB: > { %s31_s12 = sadd.s32 1, %s612_s10  ;;  %p548_p0 = scmp.ge.s32.totalorder %s616_s11, 1  ;;  %s616_s11 = sphi %s638_s11, %s12_s11   ;;  %s612_s10 = sphi %s636_s10, %s709_s10   ;;  %s608_s9 = sphi %s634_s9, %s708_s9  }
   0x3   : > { %p33_p1 = scmp.ge.s32.totalorder %s31_s12, 2  ;;  %p176_p2 = scmp.lt.s32.totalorder %s616_s11, 3 }
   0x5   : > { %s711_s12 = smov (%p33_p1, %s31_s12), 0  ;;  %p177_p3 = pnand %p548_p0, %p176_p2 }
   0x6   : > { %p219_p4 = scmp.lt.s32.totalorder (!%p177_p3), %s608_s9, 1  ;;  %v618_v0 = vmov (!%p177_p3), 0.0   ;;  %vm358_vm8 = vcmask (!%p177_p3), 1041408   ;;  %vm391_vm9 = vcmask (!%p177_p3), 1041409   ;;  %vm393_vm10 = vcmask (!%p177_p3), 1042434  }
   0x7   : > { %180 = sbr.rel (%p177_p3) target bundleno = 240 (0xf0), region = 28  ;;  %254 = vst [vmem:[#allocation2] sm:$0x3] (!%p177_p3), %v618_v0  ;;  %255 = vst [vmem:[#allocation2 + $0x2] sm:$0x3] (!%p177_p3), %v618_v0  ;;  %vm395_vm11 = vcmask (!%p177_p3), 1043459  }
   0x8   : > { %256 = vst [vmem:[#allocation2 + $0x4] sm:$0x3] (!%p177_p3), %v618_v0  ;;  %257 = vst [vmem:[#allocation2 + $0x6] sm:$0x3] (!%p177_p3), %v618_v0  ;;  %vm398_vm12 = vcmask (!%p177_p3), 1043456   ;;  %vm445_vm13 = vcmask (!%p177_p3), 3072  }
   0x9   : > { %258 = vst [vmem:[#allocation3] sm:$0x3] (!%p177_p3), %v618_v0  ;;  %259 = vst [vmem:[#allocation3 + $0x2] sm:$0x3] (!%p177_p3), %v618_v0  ;;  %vm447_vm14 = vcmask (!%p177_p3), 11272  }
   0xa   : > { %260 = vst [vmem:[#allocation3 + $0x4] sm:$0x3] (!%p177_p3), %v618_v0  ;;  %261 = vst [vmem:[#allocation3 + $0x6] sm:$0x3] (!%p177_p3), %v618_v0 }
   0xe   : > { %s713_s9 = smov (!%p219_p4, %s608_s9), 1  ;;  %v300_v37 = vld [vmem:[#allocation2] sm:$0x3]  ;;  %v314_v39 = vld [vmem:[#allocation2 + $0x2] sm:$0x3] }
   0xf   : > { %s558_s13 = sshll.u32 %s713_s9, 3  ;;  %s551_s17 = sshll.u32 %s713_s9, 1  ;;  %v329_v42 = vld [vmem:[#allocation2 + $0x4] sm:$0x3]  ;;  %v344_v44 = vld [vmem:[#allocation2 + $0x6] sm:$0x3] }
  0x10   : > { %s226_s16 = scalar_lea.vmem %s705_s0, %s558_s13  ;;  %s239_s20 = scalar_lea.vmem %s706_s1, %s551_s17  ;;  %v303_v45 = vld [vmem:[#allocation3] sm:$0x3]  ;;  %v318_v50 = vld [vmem:[#allocation3 + $0x2] sm:$0x3] }
  0x11   : > { %v263_v1 = vld [vmem:[%s226_s16] sm:$0x3]  ;;  %v553_v2 = vld [vmem:[%s226_s16 + $0x2] sm:$0x3]  ;;  %v554_v3 = vld [vmem:[%s226_s16 + $0x4] sm:$0x3] }
  0x12   : > { %v270_v4 = vmax.f32 %v263_v1, %v553_v2  ;;  %v555_v5 = vld [vmem:[%s226_s16 + $0x6] sm:$0x3]  ;;  %v262_v23 = vld [vmem:[%s239_s20] sm:$0x3]  ;;  %v333_v51 = vld [vmem:[#allocation3 + $0x4] sm:$0x3] }
  0x13   : > { %vm293_vm0 = vcmp.eq.s32.totalorder %v262_v23, 0  ;;  %vm306_vm1 = vcmp.eq.s32.totalorder %v262_v23, 1  ;;  %vm321_vm2 = vcmp.eq.s32.totalorder %v262_v23, 2  ;;  %vm336_vm3 = vcmp.eq.s32.totalorder %v262_v23, 3  ;;  %v348_v52 = vld [vmem:[#allocation3 + $0x6] sm:$0x3] }
  0x14   : > { %v271_v6 = vmax.f32 %v270_v4, %v554_v3  ;;  %v294_v25 = vsel %vm293_vm0, 0.8, %v618_v0  ;;  %v307_v30 = vsel %vm306_vm1, 0.8, %v618_v0  ;;  %v322_v31 = vsel %vm321_vm2, 0.8, %v618_v0 }
  0x15   : > { %v337_v32 = vsel %vm336_vm3, 0.8, %v618_v0  ;;  %s552_s21 = sshll.u32 %s713_s9, 2 }
  0x16   : > { %v272_v7 = vmax.f32 %v271_v6, %v555_v5  ;;  %s249_s24 = scalar_lea.vmem %s707_s2, %s552_s21 }
  0x18   : > { %v273_v8 = vsub.f32 %v263_v1, %v272_v7  ;;  %v276_v9 = vsub.f32 %v553_v2, %v272_v7  ;;  %v279_v10 = vsub.f32 %v554_v3, %v272_v7  ;;  %v282_v11 = vsub.f32 %v555_v5, %v272_v7 }
  0x1a   : > { %v274_v12 = vmul.f32 1.442695, %v273_v8  ;;  %v277_v13 = vmul.f32 1.442695, %v276_v9  ;;  %v280_v14 = vmul.f32 1.442695, %v279_v10 }
  0x1b   : > { %v283_v15 = vmul.f32 1.442695, %v282_v11 }
  0x1c   : > { %584 = vpow2.f32 %v274_v12 }
  0x1d   : > { %586 = vpow2.f32 %v277_v13 }
  0x1e   : > { %588 = vpow2.f32 %v280_v14 }
  0x1f   : > { %590 = vpow2.f32 %v283_v15 }
  0x26   : > { %v585_v16 = vpop.eup %584 }
  0x27   : > { %v587_v17 = vpop.eup %586 }
  0x28   : > { %v589_v18 = vpop.eup %588  ;;  %v285_v19 = vadd.f32 %v587_v17, %v585_v16 }
  0x29   : > { %v591_v20 = vpop.eup %590 }
  0x2a   : > { %v286_v21 = vadd.f32 %v589_v18, %v285_v19 }
  0x2c   : > { %v287_v22 = vadd.f32 %v591_v20, %v286_v21 }
  0x2e   : > { %592 = vrcp.f32 %v287_v22 }
  0x38   : > { %v593_v24 = vpop.eup %592 }
  0x39   : > { %v289_v26 = vmul.f32 %v593_v24, %v585_v16  ;;  %v290_v27 = vmul.f32 %v593_v24, %v587_v17  ;;  %v291_v28 = vmul.f32 %v593_v24, %v589_v18  ;;  %v292_v29 = vmul.f32 %v593_v24, %v591_v20 }
  0x3b   : > { %vm295_vm4 = vcmp.gt.f32.partialorder %v289_v26, 0.5  ;;  %vm308_vm5 = vcmp.gt.f32.partialorder %v290_v27, 0.5  ;;  %vm323_vm6 = vcmp.gt.f32.partialorder %v291_v28, 0.5  ;;  %vm338_vm7 = vcmp.gt.f32.partialorder %v292_v29, 0.5 }
  0x3c   : > { %v296_v33 = vsel %vm295_vm4, 0.2, %v618_v0  ;;  %v309_v34 = vsel %vm308_vm5, 0.2, %v618_v0  ;;  %v324_v35 = vsel %vm323_vm6, 0.2, %v618_v0 }
  0x3d   : > { %v297_v36 = vadd.f32 %v296_v33, %v294_v25  ;;  %v310_v38 = vadd.f32 %v309_v34, %v307_v30  ;;  %v325_v40 = vadd.f32 %v324_v35, %v322_v31  ;;  %v339_v41 = vsel %vm338_vm7, 0.2, %v618_v0 }
  0x3e   : > { %v340_v43 = vadd.f32 %v339_v41, %v337_v32 }
  0x3f   : > { %v298_v46 = vmul.f32 %v297_v36, %v289_v26  ;;  %v311_v47 = vmul.f32 %v310_v38, %v290_v27  ;;  %v326_v48 = vmul.f32 %v325_v40, %v291_v28  ;;  %v299_v49 = vadd.f32 %v297_v36, %v289_v26 }
  0x40   : > { %v341_v53 = vmul.f32 %v340_v43, %v292_v29  ;;  %v312_v54 = vadd.f32 %v310_v38, %v290_v27  ;;  %v327_v55 = vadd.f32 %v325_v40, %v291_v28  ;;  %v342_v56 = vadd.f32 %v340_v43, %v292_v29 }
  0x41   : > { %v301_v57 = vadd.f32 %v300_v37, %v298_v46  ;;  %v315_v58 = vadd.f32 %v314_v39, %v311_v47  ;;  %v330_v59 = vadd.f32 %v329_v42, %v326_v48  ;;  %v304_v60 = vadd.f32 %v303_v45, %v299_v49 }
  0x42   : > { %v345_v61 = vadd.f32 %v344_v44, %v341_v53  ;;  %v319_v62 = vadd.f32 %v318_v50, %v312_v54  ;;  %v334_v63 = vadd.f32 %v333_v51, %v327_v55  ;;  %v349_v0 = vadd.f32 %v348_v52, %v342_v56 }
  0x43   : > { %302 = vst [vmem:[#allocation2] sm:$0x3] %v301_v57  ;;  %316 = vst [vmem:[#allocation2 + $0x2] sm:$0x3] %v315_v58 }
  0x44   : > { %331 = vst [vmem:[#allocation2 + $0x4] sm:$0x3] %v330_v59  ;;  %305 = vst [vmem:[#allocation3] sm:$0x3] %v304_v60 }
  0x45   : > { %346 = vst [vmem:[#allocation2 + $0x6] sm:$0x3] %v345_v61  ;;  %320 = vst [vmem:[#allocation3 + $0x2] sm:$0x3] %v319_v62 }
  0x46   : > { %335 = vst [vmem:[#allocation3 + $0x4] sm:$0x3] %v334_v63  ;;  %350 = vst [vmem:[#allocation3 + $0x6] sm:$0x3] %v349_v0 }
  0x4a   : > { %v354_v1 = vld [vmem:[#allocation2] sm:$0x3]  ;;  %v355_v2 = vld [vmem:[#allocation2 + $0x2] sm:$0x3] }
  0x4b   : > { %v356_v3 = vld [vmem:[#allocation2 + $0x4] sm:$0x3]  ;;  %v359_v5 = vsel %vm358_vm8, %v354_v1, 0.0  ;;  %v366_v6 = vsel %vm358_vm8, %v355_v2, 0.0  ;;  %v402_v12 = vld [vmem:[#allocation3] sm:$0x3] }
  0x4c   : > { %v357_v4 = vld [vmem:[#allocation2 + $0x6] sm:$0x3]  ;;  %v373_v7 = vsel %vm358_vm8, %v356_v3, 0.0  ;;  %v360_v8 = vrot.slane %v359_v5, 4  ;;  %v367_v9 = vrot.slane %v366_v6, 4  ;;  %v406_v16 = vsel %vm358_vm8, %v402_v12, 0.0 }
  0x4d   : > { %v374_v10 = vrot.slane %v373_v7, 4  ;;  %v380_v11 = vsel %vm358_vm8, %v357_v4, 0.0  ;;  %v403_v14 = vld [vmem:[#allocation3 + $0x2] sm:$0x3]  ;;  %v404_v15 = vld [vmem:[#allocation3 + $0x4] sm:$0x3] }
  0x4e   : > { %v381_v13 = vrot.slane %v380_v11, 4  ;;  %v361_v17 = vadd.f32 %v360_v8, %v359_v5  ;;  %v368_v18 = vadd.f32 %v367_v9, %v366_v6  ;;  %v405_v20 = vld [vmem:[#allocation3 + $0x6] sm:$0x3]  ;;  %v407_v21 = vrot.slane %v406_v16, 4 }
  0x4f   : > { %v375_v19 = vadd.f32 %v374_v10, %v373_v7  ;;  %v413_v23 = vsel %vm358_vm8, %v403_v14, 0.0  ;;  %v420_v24 = vsel %vm358_vm8, %v404_v15, 0.0  ;;  %v427_v25 = vsel %vm358_vm8, %v405_v20, 0.0 }
  0x50   : > { %v382_v22 = vadd.f32 %v381_v13, %v380_v11  ;;  %v362_v26 = vrot.slane %v361_v17, 2  ;;  %v369_v27 = vrot.slane %v368_v18, 2  ;;  %v408_v29 = vadd.f32 %v407_v21, %v406_v16 }
  0x51   : > { %v376_v28 = vrot.slane %v375_v19, 2  ;;  %v414_v31 = vrot.slane %v413_v23, 4  ;;  %v421_v32 = vrot.slane %v420_v24, 4  ;;  %v428_v33 = vrot.slane %v427_v25, 4 }
  0x52   : > { %v383_v30 = vrot.slane %v382_v22, 2  ;;  %v363_v34 = vadd.f32 %v362_v26, %v361_v17  ;;  %v370_v35 = vadd.f32 %v369_v27, %v368_v18  ;;  %v409_v37 = vrot.slane %v408_v29, 2 }
  0x53   : > { %v377_v36 = vadd.f32 %v376_v28, %v375_v19  ;;  %v415_v39 = vadd.f32 %v414_v31, %v413_v23  ;;  %v422_v40 = vadd.f32 %v421_v32, %v420_v24  ;;  %v429_v41 = vadd.f32 %v428_v33, %v427_v25 }
  0x54   : > { %v384_v38 = vadd.f32 %v383_v30, %v382_v22  ;;  %v364_v42 = vrot.slane %v363_v34, 1  ;;  %v371_v43 = vrot.slane %v370_v35, 1  ;;  %v410_v45 = vadd.f32 %v409_v37, %v408_v29 }
  0x55   : > { %v378_v44 = vrot.slane %v377_v36, 1  ;;  %v416_v47 = vrot.slane %v415_v39, 2  ;;  %v423_v48 = vrot.slane %v422_v40, 2  ;;  %v430_v49 = vrot.slane %v429_v41, 2 }
  0x56   : > { %v385_v46 = vrot.slane %v384_v38, 1  ;;  %v365_v50 = vadd.f32 %v364_v42, %v363_v34  ;;  %v372_v51 = vadd.f32 %v371_v43, %v370_v35  ;;  %v411_v53 = vrot.slane %v410_v45, 1 }
  0x57   : > { %v379_v52 = vadd.f32 %v378_v44, %v377_v36  ;;  %v417_v55 = vadd.f32 %v416_v47, %v415_v39  ;;  %v424_v56 = vadd.f32 %v423_v48, %v422_v40  ;;  %v431_v57 = vadd.f32 %v430_v49, %v429_v41 }
  0x58   : > { %v386_v54 = vadd.f32 %v385_v46, %v384_v38  ;;  %v392_v58 = vsel %vm391_vm9, %v372_v51, %v365_v50  ;;  %v412_v59 = vadd.f32 %v411_v53, %v410_v45 }
  0x59   : > { %v394_v60 = vsel %vm393_vm10, %v379_v52, %v392_v58  ;;  %v418_v61 = vrot.slane %v417_v55, 1  ;;  %v425_v62 = vrot.slane %v424_v56, 1  ;;  %v432_v63 = vrot.slane %v431_v57, 1 }
  0x5a   : > { %v396_v0 = vsel %vm395_vm11, %v386_v54, %v394_v60 }
  0x5b   : > { %v399_v1 = vsel %vm398_vm12, %v396_v0, 0.0  ;;  %v419_v2 = vadd.f32 %v418_v61, %v417_v55  ;;  %v426_v3 = vadd.f32 %v425_v62, %v424_v56  ;;  %v433_v4 = vadd.f32 %v432_v63, %v431_v57 }
  0x5c   : > { %400 = vadd.xlane.f32.xlu0 %v399_v1 }
  0x5d   : > { %v438_v5 = vsel %vm391_vm9, %v419_v2, %v412_v59 }
  0x5e   : > { %v439_v6 = vsel %vm393_vm10, %v426_v3, %v438_v5 }
  0x5f   : > { %v440_v7 = vsel %vm395_vm11, %v433_v4, %v439_v6 }
  0x60   : > { %v442_v8 = vsel %vm398_vm12, %v440_v7, 0.0 }
  0x61   : > { %443 = vadd.xlane.f32.xlu0 %v442_v8 }
  0xe9   : > { %v401_v9 = vpop.xlane.xlu0 %400 }
  0xea   : > { %446 = vst.msk [vmem:[%s249_s24] sm:$0xf] %vm445_vm13, %v401_v9 }
  0xee   : > { %v444_v10 = vpop.xlane.xlu0 %443 }
  0xef   : > { %448 = vst.msk [vmem:[%s249_s24] sm:$0xf] %vm447_vm14, %v444_v10 }
  0xf0 PF: > { %s12_s11 = sadd.s32 1, %s616_s11   ;;  %s708_s9 = smov %s612_s10 }
  0xf1   : > { %p9_p5 = scmp.ge.s32.totalorder %s12_s11, 4   ;;  %s709_s10 = smov %s711_s12 }
  0xf3   :  { %11 = sbr.rel (!%p9_p5) target bundleno = 2 (0x2), region = 78 }

</bundles_post_ra>
